<compile_context>
chip_gen: v5e
topology: v5e:2x2
jax: 0.10.0
libtpu: 0.0.40
codegen_flags: <defaults>
</compile_context>

<pallas_src>
import jax
import jax.numpy as jnp
from jax.experimental import pallas as pl
from jax.experimental.pallas import tpu as pltpu

# Module hyper-parameters (from the PyTorch source)
BATCH_SIZE = 1
SEQ_LEN = 1
INPUT_SIZE = 5
HIDDEN_SIZE = 5
NUM_CLASSES = 5
NUM_LAYERS = 1


def _rnn_cell_kernel(x_ref, h_ref, w_ref, hnew_ref):
    """Fused tanh-RNN cell:  h' = tanh([x, h, 1] @ [W_ih^T ; W_hh^T ; b]).

    x_ref:    (1, I)        input row
    h_ref:    (1, H)        previous hidden row
    w_ref:    (I+H+1, H)    stacked [W_ih^T ; W_hh^T ; b_ih + b_hh]
    hnew_ref: (1, H)        new hidden state (== RNN output for seq_len 1)
    """
    one = jnp.ones((1, 1), dtype=jnp.float32)
    # Lane-major concat of the tiny operands (fits in a single vreg row); the
    # trailing 1 picks up the bias row of w_aug, so no separate bias operand.
    xh1 = jnp.concatenate(
        [x_ref[...].astype(jnp.float32),
         h_ref[...].astype(jnp.float32),
         one],
        axis=1)                                                   # (1, I+H+1)
    # One padded MXU pass; result lands directly in (1, H) lane orientation.
    z = jnp.dot(xh1, w_ref[...], preferred_element_type=jnp.float32)
    hnew_ref[...] = jnp.tanh(z)                                   # EUP


def prepare_params(w_ih, w_hh, b_ih, b_hh):
    """One-time parameter prep (NOT per call).

    Returns:
      w_aug: (I + H + 1, H) float32 -- rows: W_ih^T, then W_hh^T, then b_ih+b_hh.
    """
    w_aug = jnp.concatenate(
        [w_ih.T, w_hh.T, (b_ih + b_hh).reshape(1, -1)], axis=0
    ).astype(jnp.float32)
    return w_aug


# Whole-array, gridless VMEM placement (no blocking/pipelining machinery).
_VMEM_SPEC = pl.BlockSpec(memory_space=pltpu.MemorySpace.VMEM)


def rnn_forward(x, hidden, w_aug):
    """Mirror of Model.forward: returns (hidden, out).

    x:      (batch, seq, input) with batch = seq = 1 (fixed by the module)
    hidden: (num_layers, batch, hidden)
    w_aug:  (input + hidden + 1, hidden) pre-stacked transposed weights + bias row
    """
    B, S, I = x.shape
    K1, H = w_aug.shape
    assert B == BATCH_SIZE == 1 and S == SEQ_LEN == 1, "module fixes batch = seq = 1"
    assert K1 == I + H + 1

    # Pure reshapes (no concat, no cast): the kernel sees x and h directly.
    x_row = x.reshape(B * S, I)               # (1, I)
    h_row = hidden.reshape(NUM_LAYERS * B, H)  # (1, H)

    flops = 2 * K1 * H
    bytes_accessed = 4 * (I + H + K1 * H + H)
    h_new = pl.pallas_call(
        _rnn_cell_kernel,
        out_shape=jax.ShapeDtypeStruct((1, H), jnp.float32),
        in_specs=[_VMEM_SPEC, _VMEM_SPEC, _VMEM_SPEC],
        out_specs=_VMEM_SPEC,
        cost_estimate=pl.CostEstimate(
            flops=flops, transcendentals=H, bytes_accessed=bytes_accessed),
    )(x_row, h_row, w_aug)

    hidden_out = h_new.reshape(NUM_LAYERS, B, H)   # (1, 1, 5)
    out = h_new.reshape(-1, NUM_CLASSES)           # (1, 5)
    return hidden_out, out


def init_params(key):
    """Deterministic parameter init matching nn.RNN's shapes (U(-1/sqrt(H), 1/sqrt(H)))."""
    k1, k2, k3, k4 = jax.random.split(key, 4)
    bound = 1.0 / jnp.sqrt(jnp.float32(HIDDEN_SIZE))
    w_ih = jax.random.uniform(k1, (HIDDEN_SIZE, INPUT_SIZE), jnp.float32, -bound, bound)
    w_hh = jax.random.uniform(k2, (HIDDEN_SIZE, HIDDEN_SIZE), jnp.float32, -bound, bound)
    b_ih = jax.random.uniform(k3, (HIDDEN_SIZE,), jnp.float32, -bound, bound)
    b_hh = jax.random.uniform(k4, (HIDDEN_SIZE,), jnp.float32, -bound, bound)
    return w_ih, w_hh, b_ih, b_hh


if __name__ == "__main__":
    key = jax.random.PRNGKey(0)
    k_params, k_x = jax.random.split(key)

    w_ih, w_hh, b_ih, b_hh = init_params(k_params)
    # Fold / transpose weights and biases exactly once (hoisted out of the forward path).
    w_aug = prepare_params(w_ih, w_hh, b_ih, b_hh)

    # Input consistent with forward(): x.view(1, 1, 5)
    x = jax.random.normal(k_x, (BATCH_SIZE, SEQ_LEN, INPUT_SIZE), jnp.float32)
    # init_hidden(): zeros(num_layers, batch, hidden)
    hidden0 = jnp.zeros((NUM_LAYERS, BATCH_SIZE, HIDDEN_SIZE), jnp.float32)

    fwd = jax.jit(rnn_forward)
    hidden, out = fwd(x, hidden0, w_aug)
    jax.block_until_ready((hidden, out))

    # Pure-JAX reference of the original (unfused) RNN cell semantics.
    z_ref = (x.reshape(BATCH_SIZE, INPUT_SIZE) @ w_ih.T + b_ih
             + hidden0.reshape(BATCH_SIZE, HIDDEN_SIZE) @ w_hh.T + b_hh)
    h_ref = jnp.tanh(z_ref)

    assert hidden.shape == (NUM_LAYERS, BATCH_SIZE, HIDDEN_SIZE)
    assert out.shape == (BATCH_SIZE * SEQ_LEN, NUM_CLASSES)
    assert jnp.allclose(out, h_ref, atol=1e-5)
    assert jnp.allclose(hidden.reshape(BATCH_SIZE, HIDDEN_SIZE), h_ref, atol=1e-5)

    print("KERNEL_OK")
</pallas_src>

<mosaic_0001>
module attributes {stable_mosaic.version = 11 : i64} {
  func.func @_rnn_cell_kernel(%arg0: memref<1x5xf32, #tpu.memory_space<vmem>>, %arg1: memref<1x5xf32, #tpu.memory_space<vmem>>, %arg2: memref<11x5xf32, #tpu.memory_space<vmem>>, %arg3: memref<1x5xf32, #tpu.memory_space<vmem>>) attributes {dimension_semantics = [], scalar_prefetch = 0 : i64, scratch_operands = 0 : i64, tpu.core_type = #tpu.core_type<tc>} {
    %cst = arith.constant 1.000000e+00 : f32
    %0 = vector.broadcast %cst : f32 to vector<1x1xf32>
    %c0 = arith.constant 0 : index
    %c0_0 = arith.constant 0 : index
    %1 = vector.load %arg0[%c0, %c0_0] : memref<1x5xf32, #tpu.memory_space<vmem>>, vector<1x5xf32>
    %c0_1 = arith.constant 0 : index
    %c0_2 = arith.constant 0 : index
    %2 = vector.load %arg1[%c0_1, %c0_2] : memref<1x5xf32, #tpu.memory_space<vmem>>, vector<1x5xf32>
    %3 = tpu.concatenate %1, %2, %0 in 1 : vector<1x5xf32>, vector<1x5xf32>, vector<1x1xf32> -> vector<1x11xf32>
    %c0_3 = arith.constant 0 : index
    %c0_4 = arith.constant 0 : index
    %4 = vector.load %arg2[%c0_3, %c0_4] : memref<11x5xf32, #tpu.memory_space<vmem>>, vector<11x5xf32>
    %cst_5 = arith.constant dense<0.000000e+00> : vector<1x5xf32>
    %5 = tpu.matmul %3, %4, %cst_5 {dimension_numbers = #tpu.dot_dimension_numbers<[1], [0], [0], [1], [0, 0, 1, 1], [], []>} : vector<1x11xf32>, vector<11x5xf32>, vector<1x5xf32> -> vector<1x5xf32>
    %6 = math.tanh %5 : vector<1x5xf32>
    %c0_6 = arith.constant 0 : index
    %c0_7 = arith.constant 0 : index
    %7 = vector.load %arg3[%c0_6, %c0_7] : memref<1x5xf32, #tpu.memory_space<vmem>>, vector<1x5xf32>
    tpu.vector_store %arg3[%c0_6, %c0_7], %6 {strides = array<i32>} : memref<1x5xf32, #tpu.memory_space<vmem>>, vector<1x5xf32>,
    return
  }
}

</mosaic_0001>

<bundles_post_ra>
// kernel: rnn_forward.1
= control target key start
LH: loop header
LB: loop body
LE: loop exit
PB: predicated region body
PF: predicated region fallthrough
CT: control target
= control target key end

     0   :  { %s68_s14 = smov 5   ;;  %vm31_vm0 = vcmask 1042432   ;;  %vm21_vm1 = vcmask 39936   ;;  %vm23_vm2 = vcmask 80896   ;;  %vm27_vm3 = vcmask 89088   ;;  %s104_s1 = inlined_call_operand.vmem [shape: f32[1,5], index: 1, kind: input, shape index: {}]   ;;  %s105_s2 = inlined_call_operand.vmem [shape: f32[11,5], index: 2, kind: input, shape index: {}]   ;;  %s106_s0 = inlined_call_operand.vmem [shape: f32[1,5], index: 0, kind: input, shape index: {}]   ;;  %s107_s3 = inlined_call_operand.vmem [shape: f32[1,5], index: 3, kind: output, shape index: {}]  }
   0x1   :  { %v65_v0 = vld [vmem:[%s104_s1] ss:$0 sm:$0xff]  ;;  %v26_v1 = vld [vmem:[%s105_s2 + $0x8] sm:$0x7]  ;;  %vm56_vm4 = vcmask 32768  }
   0x2   :  { %18 = vrot.lane.b32.xlu0 %v65_v0, %s68_s14  ;;  %62 = vmatpush.msk.msra.mxu0 %vm31_vm0, %v26_v1  ;;  %v25_v2 = vld [vmem:[%s105_s2] sm:$0xff] }
   0x3   :  { %v14_v3 = vld [vmem:[%s106_s0] sm:$0x1] }
   0x4   :  { %50 = vmatpush.msra.mxu0 %v25_v2 }
  0x74   :  { %v19_v4 = vpop.permute.xlu0 %18 }
  0x75   :  { %v22_v5 = vsel %vm21_vm1, %v14_v3, %v19_v4 }
  0x76   :  { %v24_v6 = vsel %vm23_vm2, %v22_v5, 1.0 }
  0x77   :  { %63 = vmatmul.msk.f32.vlgmr.msra.gmra.mxu0 %vm27_vm3, %v24_v6 }
  0xf4   :  { %v52_v7 = vpop.f32.mrf.mxu0 }
  0xf5   :  { %66 = vtanh.f32 %v52_v7 }
  0xfb   :  { %v67_v8 = vpop.eup %66 }
  0xfc   :  { %57 = vst.msk [vmem:[%s107_s3] sm:$0x1] %vm56_vm4, %v67_v8 }

</bundles_post_ra>
